<compile_context>
chip_gen: v6e
topology: v6e:2x2x1
jax: 0.10.0
libtpu: 0.0.40
codegen_flags: <defaults>
</compile_context>

<pallas_src>
import functools

import jax
import jax.numpy as jnp
from jax.experimental import pallas as pl
from jax.experimental.pallas import tpu as pltpu

LANE = 128
SUBLANE = 8


def _round_up(n, m):
    return ((n + m - 1) // m) * m


def _fused_mlp_kernel(*refs):
    """Fused forward of the whole MLP for one batch tile.

    refs layout: (x_ref, wt0_ref, b0_ref, wt1_ref, b1_ref, ..., out_ref)
      x_ref:   [TB, In]         (VMEM, batch tile)
      wti_ref: [In_i, Out_i]    (VMEM, pre-transposed, zero-padded; resident
                                 across all grid steps via constant index_map)
      bi_ref:  [1, Out_i]       (VMEM, zero-padded, broadcast over batch)
      out_ref: [TB, Out_last]   (VMEM, lane-padded to 128)
    Intermediates never leave vregs/VMEM.
    """
    x_ref = refs[0]
    out_ref = refs[-1]
    layer_refs = refs[1:-1]
    n_layers = len(layer_refs) // 2

    h = x_ref[...]
    for i in range(n_layers):
        wt = layer_refs[2 * i][...]
        b = layer_refs[2 * i + 1][...]
        h = jnp.dot(h, wt, preferred_element_type=jnp.float32) + b
    out_ref[...] = h.astype(out_ref.dtype)


def fused_mlp(x, padded_params, *, batch_tile=256):
    """x: [B, In] f32; padded_params: tuple of (wt [In_pad, Out_pad], b [1, Out_pad]).

    Returns the padded logits slab [B, Out_pad_last] (Out_pad_last multiple of 128).
    """
    B, in_f = x.shape
    TB = min(batch_tile, _round_up(B, SUBLANE))
    nb = pl.cdiv(B, TB)
    B_pad = nb * TB
    if B_pad != B:
        x = jnp.pad(x, ((0, B_pad - B), (0, 0)))

    flat_args = [x]
    # x / out are indexed by the batch-grid axis; weights/biases use a constant
    # index_map so Pallas DMAs them once and keeps them VMEM-resident.
    in_specs = [pl.BlockSpec((TB, in_f), lambda i: (i, 0))]

    flops = 0
    bytes_accessed = x.size * x.dtype.itemsize
    for (wt, b) in padded_params:
        flat_args.append(wt)
        flat_args.append(b)
        in_specs.append(pl.BlockSpec(wt.shape, lambda i: (0, 0)))
        in_specs.append(pl.BlockSpec(b.shape, lambda i: (0, 0)))
        flops += 2 * B_pad * wt.shape[0] * wt.shape[1]
        bytes_accessed += wt.size * wt.dtype.itemsize + b.size * b.dtype.itemsize

    out_pad = padded_params[-1][0].shape[1]
    bytes_accessed += B_pad * out_pad * 4

    out = pl.pallas_call(
        _fused_mlp_kernel,
        out_shape=jax.ShapeDtypeStruct((B_pad, out_pad), jnp.float32),
        grid=(nb,),
        in_specs=in_specs,
        out_specs=pl.BlockSpec((TB, out_pad), lambda i: (i, 0)),
        compiler_params=pltpu.CompilerParams(
            dimension_semantics=("parallel",),
        ),
        cost_estimate=pl.CostEstimate(
            flops=flops, transcendentals=0, bytes_accessed=bytes_accessed
        ),
    )(*flat_args)

    if B_pad != B:
        out = out[:B]
    return out


def init_cnn_params(key, input_size, hidden_layer_config, output_size):
    """Deterministic parameter init mirroring nn.Linear's default
    (uniform in [-1/sqrt(fan_in), 1/sqrt(fan_in)]). Stored PyTorch-style
    as (w [Out, In], b [Out]) for the reference check."""
    sizes = [input_size] + list(hidden_layer_config) + [output_size]
    params = []
    for i in range(len(sizes) - 1):
        fan_in, fan_out = sizes[i], sizes[i + 1]
        key, wk, bk = jax.random.split(key, 3)
        bound = 1.0 / jnp.sqrt(jnp.float32(fan_in))
        w = jax.random.uniform(wk, (fan_out, fan_in), jnp.float32, -bound, bound)
        b = jax.random.uniform(bk, (fan_out,), jnp.float32, -bound, bound)
        params.append((w, b))
    return params


def pad_and_transpose_params(raw_params, input_size):
    """One-time (init-time) layout prep: transpose to [In, Out] and zero-pad.

    Hidden Out dims pad only to the sublane granule (8); the FINAL Out dim pads
    to the lane granule (128) so the output store is lane-dense. Padded
    rows/cols/bias entries are exactly zero, so padded activation lanes stay
    exactly zero and the math is unchanged (this invariant matters if an
    activation function is ever inserted — it must be zero-preserving)."""
    padded = []
    prev_width = input_size  # width of the (padded) activation feeding this layer
    n_layers = len(raw_params)
    for idx, (w, b) in enumerate(raw_params):
        out_f, in_f = w.shape
        is_last = idx == n_layers - 1
        out_pad = _round_up(out_f, LANE if is_last else SUBLANE)
        wt = jnp.zeros((prev_width, out_pad), jnp.float32).at[:in_f, :out_f].set(w.T)
        bp = jnp.zeros((1, out_pad), jnp.float32).at[0, :out_f].set(b)
        padded.append((wt, bp))
        prev_width = out_pad
    return tuple(padded)


@functools.partial(
    jax.jit, static_argnames=("output_size", "slice_output", "batch_tile")
)
def cnn_forward(x, padded_params, *, output_size, slice_output=True, batch_tile=256):
    """Single fused, batch-gridded Pallas kernel for the whole MLP forward.

    slice_output=False returns the padded [B, 128] logits slab so a fused
    downstream softmax/loss can mask the padded lanes instead of paying an
    extra narrow-slice copy per call."""
    out = fused_mlp(x, padded_params, batch_tile=batch_tile)
    if slice_output:
        out = out[:, :output_size]
    return out


if __name__ == "__main__":
    # Module hyper-params (defaults from the reference module).
    input_size = 32
    hidden_layer_config = [15]   # default from the reference module
    output_size = 10
    batch = 512                  # 2 grid steps of 256 rows (fills the MXU M dim)

    key = jax.random.PRNGKey(0)
    key, xk = jax.random.split(key)
    x = jax.random.normal(xk, (batch, input_size), jnp.float32)

    raw_params = init_cnn_params(key, input_size, hidden_layer_config, output_size)
    padded_params = pad_and_transpose_params(raw_params, input_size)

    y = cnn_forward(x, padded_params, output_size=output_size)
    y = jax.block_until_ready(y)

    # Pure-JAX reference (same math, un-padded PyTorch-layout params).
    ref = x
    for (w, b) in raw_params:
        ref = ref @ w.T + b

    assert y.shape == (batch, output_size)
    assert jnp.allclose(y, ref, atol=1e-5, rtol=1e-5)

    # Also exercise a non-tile-multiple batch to check the padding path.
    y_small = cnn_forward(x[:13], padded_params, output_size=output_size)
    y_small = jax.block_until_ready(y_small)
    assert y_small.shape == (13, output_size)
    assert jnp.allclose(y_small, ref[:13], atol=1e-5, rtol=1e-5)

    print("KERNEL_OK")
</pallas_src>

<mosaic_0001>
module attributes {stable_mosaic.version = 11 : i64} {
  func.func @_fused_mlp_kernel(%arg0: i32, %arg1: memref<256x32xf32, #tpu.memory_space<vmem>>, %arg2: memref<32x16xf32, #tpu.memory_space<vmem>>, %arg3: memref<1x16xf32, #tpu.memory_space<vmem>>, %arg4: memref<16x128xf32, #tpu.memory_space<vmem>>, %arg5: memref<1x128xf32, #tpu.memory_space<vmem>>, %arg6: memref<256x128xf32, #tpu.memory_space<vmem>>) attributes {dimension_semantics = [#tpu.dimension_semantics<parallel>], iteration_bounds = array<i64: 2>, scalar_prefetch = 0 : i64, scratch_operands = 0 : i64, tpu.core_type = #tpu.core_type<tc>, window_params = [{transform_indices = @transform_0, window_bounds = array<i64: 256, 32>}, {pipeline_mode = #tpu.pipeline_mode<synchronous>, transform_indices = @transform_1, window_bounds = array<i64: 32, 16>}, {pipeline_mode = #tpu.pipeline_mode<synchronous>, transform_indices = @transform_2, window_bounds = array<i64: 1, 16>}, {pipeline_mode = #tpu.pipeline_mode<synchronous>, transform_indices = @transform_3, window_bounds = array<i64: 16, 128>}, {pipeline_mode = #tpu.pipeline_mode<synchronous>, transform_indices = @transform_4, window_bounds = array<i64: 1, 128>}, {transform_indices = @transform_5, window_bounds = array<i64: 256, 128>}]} {
    %c0 = arith.constant 0 : index
    %c0_0 = arith.constant 0 : index
    %0 = vector.load %arg1[%c0, %c0_0] : memref<256x32xf32, #tpu.memory_space<vmem>>, vector<256x32xf32>
    %c0_1 = arith.constant 0 : index
    %c0_2 = arith.constant 0 : index
    %1 = vector.load %arg2[%c0_1, %c0_2] : memref<32x16xf32, #tpu.memory_space<vmem>>, vector<32x16xf32>
    %c0_3 = arith.constant 0 : index
    %c0_4 = arith.constant 0 : index
    %2 = vector.load %arg3[%c0_3, %c0_4] : memref<1x16xf32, #tpu.memory_space<vmem>>, vector<1x16xf32>
    %cst = arith.constant dense<0.000000e+00> : vector<256x16xf32>
    %3 = tpu.matmul %0, %1, %cst {dimension_numbers = #tpu.dot_dimension_numbers<[1], [0], [0], [1], [0, 0, 1, 1], [], []>} : vector<256x32xf32>, vector<32x16xf32>, vector<256x16xf32> -> vector<256x16xf32>
    %4 = vector.broadcast %2 : vector<1x16xf32> to vector<256x16xf32>
    %5 = arith.addf %3, %4 : vector<256x16xf32>
    %c0_5 = arith.constant 0 : index
    %c0_6 = arith.constant 0 : index
    %6 = vector.load %arg4[%c0_5, %c0_6] : memref<16x128xf32, #tpu.memory_space<vmem>>, vector<16x128xf32>
    %c0_7 = arith.constant 0 : index
    %c0_8 = arith.constant 0 : index
    %7 = vector.load %arg5[%c0_7, %c0_8] : memref<1x128xf32, #tpu.memory_space<vmem>>, vector<1x128xf32>
    %cst_9 = arith.constant dense<0.000000e+00> : vector<256x128xf32>
    %8 = tpu.matmul %5, %6, %cst_9 {dimension_numbers = #tpu.dot_dimension_numbers<[1], [0], [0], [1], [0, 0, 1, 1], [], []>} : vector<256x16xf32>, vector<16x128xf32>, vector<256x128xf32> -> vector<256x128xf32>
    %9 = vector.broadcast %7 : vector<1x128xf32> to vector<256x128xf32>
    %10 = arith.addf %8, %9 : vector<256x128xf32>
    %c0_10 = arith.constant 0 : index
    %c0_11 = arith.constant 0 : index
    %11 = vector.load %arg6[%c0_10, %c0_11] : memref<256x128xf32, #tpu.memory_space<vmem>>, vector<256x128xf32>
    tpu.vector_store %arg6[%c0_10, %c0_11], %10 {strides = array<i32>} : memref<256x128xf32, #tpu.memory_space<vmem>>, vector<256x128xf32>,
    return
  }
  func.func @transform_0(%arg0: i32) -> (i32, i32) {
    %c0_i32 = arith.constant 0 : i32
    %c0_i32_0 = arith.constant 0 : i32
    return %arg0, %c0_i32 : i32, i32
  }
  func.func @transform_1(%arg0: i32) -> (i32, i32) {
    %c0_i32 = arith.constant 0 : i32
    %c0_i32_0 = arith.constant 0 : i32
    %c0_i32_1 = arith.constant 0 : i32
    return %c0_i32, %c0_i32_0 : i32, i32
  }
  func.func @transform_2(%arg0: i32) -> (i32, i32) {
    %c0_i32 = arith.constant 0 : i32
    %c0_i32_0 = arith.constant 0 : i32
    %c0_i32_1 = arith.constant 0 : i32
    return %c0_i32, %c0_i32_0 : i32, i32
  }
  func.func @transform_3(%arg0: i32) -> (i32, i32) {
    %c0_i32 = arith.constant 0 : i32
    %c0_i32_0 = arith.constant 0 : i32
    %c0_i32_1 = arith.constant 0 : i32
    return %c0_i32, %c0_i32_0 : i32, i32
  }
  func.func @transform_4(%arg0: i32) -> (i32, i32) {
    %c0_i32 = arith.constant 0 : i32
    %c0_i32_0 = arith.constant 0 : i32
    %c0_i32_1 = arith.constant 0 : i32
    return %c0_i32, %c0_i32_0 : i32, i32
  }
  func.func @transform_5(%arg0: i32) -> (i32, i32) {
    %c0_i32 = arith.constant 0 : i32
    %c0_i32_0 = arith.constant 0 : i32
    return %arg0, %c0_i32 : i32, i32
  }
}

</mosaic_0001>

<bundles_post_ra>
// kernel: cnn_forward.1
= control target key start
LH: loop header
LB: loop body
LE: loop exit
PB: predicated region body
PF: predicated region fallthrough
CT: control target
= control target key end

     0   :  { %s1313_s18 = smov 0   ;;  %s1561_s0 = inlined_call_operand.vmem [shape: f32[512,32], index: 0, kind: input, shape index: {}]   ;;  %s1562_s1 = inlined_call_operand.vmem [shape: f32[32,16], index: 1, kind: input, shape index: {}]   ;;  %s1563_s2 = inlined_call_operand.vmem [shape: f32[1,16], index: 2, kind: input, shape index: {}]   ;;  %s1564_s3 = inlined_call_operand.vmem [shape: f32[16,128], index: 3, kind: input, shape index: {}]   ;;  %s1565_s4 = inlined_call_operand.vmem [shape: f32[1,128], index: 4, kind: input, shape index: {}]   ;;  %s1566_s5 = inlined_call_operand.vmem [shape: f32[512,128], index: 5, kind: output, shape index: {}]  }
   0x1 LB: > { %s1012_s19 = sadd.s32 4294967295, %s1281_s18   ;;  %p1016_p0 = scmp.ge.s32.totalorder %s1281_s18, 1  ;;  %s1281_s18 = sphi %s1313_s18, %s15_s18  }
   0x2   : > { %p188_p1 = scmp.lt.s32.totalorder %s1281_s18, 3 }
   0x4   : > { %p189_p2 = pnand %p1016_p0, %p188_p1 }
   0x5   : > { %s1017_s24 = sshll.u32 (!%p189_p2), %s1012_s19, 5 }
   0x6   : > { %192 = sbr.rel (%p189_p2) target bundleno = 476 (0x1dc), region = 40  ;;  %p217_p3 = scmp.lt.s32.totalorder (!%p189_p2), %s1017_s24, 63 }
   0xb   : > { %v263_v0 = vld [vmem:[%s1562_s1 + $0x18] sm:$0xff]  ;;  %v262_v1 = vld [vmem:[%s1562_s1 + $0x10] sm:$0xff]  ;;  %v261_v2 = vld [vmem:[%s1562_s1 + $0x8] sm:$0xff]  ;;  %s1568_s24 = smov (!%p217_p3, %s1017_s24), 63  ;;  %vm271_vm0 = vcmask 261120   ;;  %vm602_vm1 = vcmask 130048  }
   0xc   : > { %1159 = vmatprep.subr.mxu0 %v263_v0  ;;  %v260_v3 = vld [vmem:[%s1562_s1] sm:$0xff]  ;;  %s1018_s29 = sshll.u32 %s1568_s24, 3  ;;  %v594_v36 = vld [vmem:[%s1564_s3 + $0x8] sm:$0xff] }
   0xd   : > { %1160 = vmatpush3.msra.mxu0 %v263_v0  ;;  %s1341_s7 = scalar_lea.vmem %s1561_s0, %s1018_s29  ;;  %1215 = vmatprep.subr.mxu1 %v594_v36  ;;  %v593_v37 = vld [vmem:[%s1564_s3] sm:$0xff]  ;;  %s1492_s19 = scalar_lea.vmem %s1566_s5, %s1018_s29 }
   0xe   : > { %1161 = vmatprep.subr.mxu0 %v262_v1  ;;  %v228_v4 = vld [vmem:[%s1341_s7] sm:$0xff]  ;;  %v229_v5 = vld [vmem:[%s1341_s7 + $0x8] sm:$0xff]  ;;  %v230_v6 = vld [vmem:[%s1341_s7 + $0x10] sm:$0xff]  ;;  %1216 = vmatpush3.msra.mxu1 %v594_v36 }
   0xf   : > { %1162 = vmatpush3.msra.mxu0 %v262_v1  ;;  %1167 = vmatprep.mubr.msk.f32.mxu0 %vm271_vm0, %v228_v4  ;;  %v231_v7 = vld [vmem:[%s1341_s7 + $0x18] sm:$0xff]  ;;  %v232_v8 = vld [vmem:[%s1341_s7 + $0x20] sm:$0xff]  ;;  %v233_v9 = vld [vmem:[%s1341_s7 + $0x28] sm:$0xff] }
  0x10   : > { %1163 = vmatprep.subr.mxu0 %v261_v2  ;;  %v234_v10 = vld [vmem:[%s1341_s7 + $0x30] sm:$0xff]  ;;  %v235_v11 = vld [vmem:[%s1341_s7 + $0x38] sm:$0xff]  ;;  %v236_v12 = vld [vmem:[%s1341_s7 + $0x40] sm:$0xff]  ;;  %1217 = vmatprep.subr.mxu1 %v593_v37 }
  0x11   : > { %1164 = vmatpush3.msra.mxu0 %v261_v2  ;;  %v237_v13 = vld [vmem:[%s1341_s7 + $0x48] sm:$0xff]  ;;  %v238_v14 = vld [vmem:[%s1341_s7 + $0x50] sm:$0xff]  ;;  %v239_v15 = vld [vmem:[%s1341_s7 + $0x58] sm:$0xff]  ;;  %1218 = vmatpush3.msra.mxu1 %v593_v37 }
  0x12   : > { %1165 = vmatprep.subr.mxu0 %v260_v3  ;;  %v240_v16 = vld [vmem:[%s1341_s7 + $0x60] sm:$0xff]  ;;  %v241_v17 = vld [vmem:[%s1341_s7 + $0x68] sm:$0xff]  ;;  %v242_v18 = vld [vmem:[%s1341_s7 + $0x70] sm:$0xff] }
  0x13   : > { %1166 = vmatpush3.msra.mxu0 %v260_v3  ;;  %v243_v19 = vld [vmem:[%s1341_s7 + $0x78] sm:$0xff]  ;;  %v244_v20 = vld [vmem:[%s1341_s7 + $0x80] sm:$0xff]  ;;  %v245_v21 = vld [vmem:[%s1341_s7 + $0x88] sm:$0xff] }
  0x14   : > { %1168 = vmatmul.mubr.msk.f32.vlgmr.msra.gmra.mxu0 %vm271_vm0, %v229_v5  ;;  %v246_v22 = vld [vmem:[%s1341_s7 + $0x90] sm:$0xff]  ;;  %v247_v23 = vld [vmem:[%s1341_s7 + $0x98] sm:$0xff]  ;;  %v248_v24 = vld [vmem:[%s1341_s7 + $0xa0] sm:$0xff] }
  0x15   : > { %1170 = vmatprep.mubr.msk.f32.mxu0 %vm271_vm0, %v230_v6  ;;  %v249_v25 = vld [vmem:[%s1341_s7 + $0xa8] sm:$0xff]  ;;  %v250_v26 = vld [vmem:[%s1341_s7 + $0xb0] sm:$0xff]  ;;  %v251_v27 = vld [vmem:[%s1341_s7 + $0xb8] sm:$0xff] }
  0x16   : > { %v252_v28 = vld [vmem:[%s1341_s7 + $0xc0] sm:$0xff]  ;;  %v253_v29 = vld [vmem:[%s1341_s7 + $0xc8] sm:$0xff]  ;;  %v254_v30 = vld [vmem:[%s1341_s7 + $0xd0] sm:$0xff] }
  0x17   : > { %v255_v31 = vld [vmem:[%s1341_s7 + $0xd8] sm:$0xff]  ;;  %v256_v32 = vld [vmem:[%s1341_s7 + $0xe0] sm:$0xff]  ;;  %v257_v33 = vld [vmem:[%s1341_s7 + $0xe8] sm:$0xff] }
  0x18   : > { %1171 = vmatmul.mubr.msk.f32.gmra.mxu0 %vm271_vm0, %v231_v7  ;;  %v258_v34 = vld [vmem:[%s1341_s7 + $0xf0] sm:$0xff]  ;;  %v259_v35 = vld [vmem:[%s1341_s7 + $0xf8] sm:$0xff]  ;;  %v1416_v39 = vld [vmem:[%s1563_s2] ss:$0 sm:$0xff] }
  0x19   : > { %1173 = vmatprep.mubr.msk.f32.mxu0 %vm271_vm0, %v232_v8 }
  0x1c   : > { %1174 = vmatmul.mubr.msk.f32.gmra.mxu0 %vm271_vm0, %v233_v9 }
  0x1d   : > { %1176 = vmatprep.mubr.msk.f32.mxu0 %vm271_vm0, %v234_v10 }
  0x20   : > { %1177 = vmatmul.mubr.msk.f32.gmra.mxu0 %vm271_vm0, %v235_v11 }
  0x21   : > { %1179 = vmatprep.mubr.msk.f32.mxu0 %vm271_vm0, %v236_v12 }
  0x24   : > { %1180 = vmatmul.mubr.msk.f32.gmra.mxu0 %vm271_vm0, %v237_v13 }
  0x25   : > { %1182 = vmatprep.mubr.msk.f32.mxu0 %vm271_vm0, %v238_v14 }
  0x28   : > { %1183 = vmatmul.mubr.msk.f32.gmra.mxu0 %vm271_vm0, %v239_v15 }
  0x29   : > { %1185 = vmatprep.mubr.msk.f32.mxu0 %vm271_vm0, %v240_v16 }
  0x2c   : > { %1186 = vmatmul.mubr.msk.f32.gmra.mxu0 %vm271_vm0, %v241_v17 }
  0x2d   : > { %1188 = vmatprep.mubr.msk.f32.mxu0 %vm271_vm0, %v242_v18 }
  0x30   : > { %1189 = vmatmul.mubr.msk.f32.gmra.mxu0 %vm271_vm0, %v243_v19 }
  0x31   : > { %1191 = vmatprep.mubr.msk.f32.mxu0 %vm271_vm0, %v244_v20 }
  0x34   : > { %1192 = vmatmul.mubr.msk.f32.gmra.mxu0 %vm271_vm0, %v245_v21 }
  0x35   : > { %1194 = vmatprep.mubr.msk.f32.mxu0 %vm271_vm0, %v246_v22 }
  0x38   : > { %1195 = vmatmul.mubr.msk.f32.gmra.mxu0 %vm271_vm0, %v247_v23 }
  0x39   : > { %1197 = vmatprep.mubr.msk.f32.mxu0 %vm271_vm0, %v248_v24 }
  0x3c   : > { %1198 = vmatmul.mubr.msk.f32.gmra.mxu0 %vm271_vm0, %v249_v25 }
  0x3d   : > { %1200 = vmatprep.mubr.msk.f32.mxu0 %vm271_vm0, %v250_v26 }
  0x40   : > { %1201 = vmatmul.mubr.msk.f32.gmra.mxu0 %vm271_vm0, %v251_v27 }
  0x41   : > { %1203 = vmatprep.mubr.msk.f32.mxu0 %vm271_vm0, %v252_v28 }
  0x44   : > { %1204 = vmatmul.mubr.msk.f32.gmra.mxu0 %vm271_vm0, %v253_v29 }
  0x45   : > { %1206 = vmatprep.mubr.msk.f32.mxu0 %vm271_vm0, %v254_v30 }
  0x48   : > { %1207 = vmatmul.mubr.msk.f32.gmra.mxu0 %vm271_vm0, %v255_v31 }
  0x49   : > { %1209 = vmatprep.mubr.msk.f32.mxu0 %vm271_vm0, %v256_v32 }
  0x4c   : > { %1210 = vmatmul.mubr.msk.f32.gmra.mxu0 %vm271_vm0, %v257_v33 }
  0x4d   : > { %1212 = vmatprep.mubr.msk.f32.mxu0 %vm271_vm0, %v258_v34 }
  0x50   : > { %1213 = vmatmul.mubr.msk.f32.gmra.mxu0 %vm271_vm0, %v259_v35 }
  0xd4   : > { %v1169_v38 = vpop.f32.mrf.mxu0 }
  0xd5   : > { %v440_v42 = vadd.f32 %v1169_v38, %v1416_v39 }
  0xd6   : > { %v434_v40 = vpop.f32.mrf.mxu0 }
  0xd7   : > { %v435_v41 = vadd.f32 %v1416_v39, %v434_v40  ;;  %v1485_v40 = vld [vmem:[%s1565_s4] ss:$0 sm:$0xff] }
  0xd8   : > { %v1172_v43 = vpop.f32.mrf.mxu0 }
  0xd9   : > { %1219 = vmatprep.mubr.msk.f32.mxu1 %vm602_vm1, %v435_v41  ;;  %v450_v46 = vadd.f32 %v1172_v43, %v1416_v39 }
  0xda   : > { %v444_v44 = vpop.f32.mrf.mxu0  ;;  %1220 = vmatmul.mubr.msk.f32.vlgmr.msra.gmra.mxu1 %vm602_vm1, %v440_v42 }
  0xdb   : > { %v445_v45 = vadd.f32 %v1416_v39, %v444_v44 }
  0xdc   : > { %v1175_v47 = vpop.f32.mrf.mxu0 }
  0xdd   : > { %1222 = vmatprep.mubr.msk.f32.mxu1 %vm602_vm1, %v445_v45  ;;  %v460_v50 = vadd.f32 %v1175_v47, %v1416_v39 }
  0xde   : > { %v454_v48 = vpop.f32.mrf.mxu0  ;;  %1223 = vmatmul.mubr.msk.f32.gmra.mxu1 %vm602_vm1, %v450_v46 }
  0xdf   : > { %v455_v49 = vadd.f32 %v1416_v39, %v454_v48 }
  0xe0   : > { %v1178_v51 = vpop.f32.mrf.mxu0 }
  0xe1   : > { %1225 = vmatprep.mubr.msk.f32.mxu1 %vm602_vm1, %v455_v49  ;;  %v470_v54 = vadd.f32 %v1178_v51, %v1416_v39 }
  0xe2   : > { %v464_v52 = vpop.f32.mrf.mxu0  ;;  %1226 = vmatmul.mubr.msk.f32.gmra.mxu1 %vm602_vm1, %v460_v50 }
  0xe3   : > { %v465_v53 = vadd.f32 %v1416_v39, %v464_v52 }
  0xe4   : > { %v1181_v55 = vpop.f32.mrf.mxu0 }
  0xe5   : > { %1228 = vmatprep.mubr.msk.f32.mxu1 %vm602_vm1, %v465_v53  ;;  %v480_v58 = vadd.f32 %v1181_v55, %v1416_v39 }
  0xe6   : > { %v474_v56 = vpop.f32.mrf.mxu0  ;;  %1229 = vmatmul.mubr.msk.f32.gmra.mxu1 %vm602_vm1, %v470_v54 }
  0xe7   : > { %v475_v57 = vadd.f32 %v1416_v39, %v474_v56 }
  0xe8   : > { %v1184_v59 = vpop.f32.mrf.mxu0 }
  0xe9   : > { %1231 = vmatprep.mubr.msk.f32.mxu1 %vm602_vm1, %v475_v57  ;;  %v490_v62 = vadd.f32 %v1184_v59, %v1416_v39 }
  0xea   : > { %v484_v60 = vpop.f32.mrf.mxu0  ;;  %1232 = vmatmul.mubr.msk.f32.gmra.mxu1 %vm602_vm1, %v480_v58 }
  0xeb   : > { %v485_v61 = vadd.f32 %v1416_v39, %v484_v60 }
  0xec   : > { %v1187_v63 = vpop.f32.mrf.mxu0 }
  0xed   : > { %1234 = vmatprep.mubr.msk.f32.mxu1 %vm602_vm1, %v485_v61  ;;  %v500_v2 = vadd.f32 %v1187_v63, %v1416_v39 }
  0xee   : > { %v494_v0 = vpop.f32.mrf.mxu0  ;;  %1235 = vmatmul.mubr.msk.f32.gmra.mxu1 %vm602_vm1, %v490_v62 }
  0xef   : > { %v495_v1 = vadd.f32 %v1416_v39, %v494_v0 }
  0xf0   : > { %v1190_v3 = vpop.f32.mrf.mxu0 }
  0xf1   : > { %1237 = vmatprep.mubr.msk.f32.mxu1 %vm602_vm1, %v495_v1  ;;  %v510_v6 = vadd.f32 %v1190_v3, %v1416_v39 }
  0xf2   : > { %v504_v4 = vpop.f32.mrf.mxu0  ;;  %1238 = vmatmul.mubr.msk.f32.gmra.mxu1 %vm602_vm1, %v500_v2 }
  0xf3   : > { %v505_v5 = vadd.f32 %v1416_v39, %v504_v4 }
  0xf4   : > { %v1193_v7 = vpop.f32.mrf.mxu0 }
  0xf5   : > { %1240 = vmatprep.mubr.msk.f32.mxu1 %vm602_vm1, %v505_v5  ;;  %v520_v10 = vadd.f32 %v1193_v7, %v1416_v39 }
  0xf6   : > { %v514_v8 = vpop.f32.mrf.mxu0  ;;  %1241 = vmatmul.mubr.msk.f32.gmra.mxu1 %vm602_vm1, %v510_v6 }
  0xf7   : > { %v515_v9 = vadd.f32 %v1416_v39, %v514_v8 }
  0xf8   : > { %v1196_v11 = vpop.f32.mrf.mxu0 }
  0xf9   : > { %1243 = vmatprep.mubr.msk.f32.mxu1 %vm602_vm1, %v515_v9  ;;  %v530_v14 = vadd.f32 %v1196_v11, %v1416_v39 }
  0xfa   : > { %v524_v12 = vpop.f32.mrf.mxu0  ;;  %1244 = vmatmul.mubr.msk.f32.gmra.mxu1 %vm602_vm1, %v520_v10 }
  0xfb   : > { %v525_v13 = vadd.f32 %v1416_v39, %v524_v12 }
  0xfc   : > { %v1199_v15 = vpop.f32.mrf.mxu0 }
  0xfd   : > { %1246 = vmatprep.mubr.msk.f32.mxu1 %vm602_vm1, %v525_v13  ;;  %v540_v18 = vadd.f32 %v1199_v15, %v1416_v39 }
  0xfe   : > { %v534_v16 = vpop.f32.mrf.mxu0  ;;  %1247 = vmatmul.mubr.msk.f32.gmra.mxu1 %vm602_vm1, %v530_v14 }
  0xff   : > { %v535_v17 = vadd.f32 %v1416_v39, %v534_v16 }
 0x100   : > { %v1202_v19 = vpop.f32.mrf.mxu0 }
 0x101   : > { %1249 = vmatprep.mubr.msk.f32.mxu1 %vm602_vm1, %v535_v17  ;;  %v550_v22 = vadd.f32 %v1202_v19, %v1416_v39 }
 0x102   : > { %v544_v20 = vpop.f32.mrf.mxu0  ;;  %1250 = vmatmul.mubr.msk.f32.gmra.mxu1 %vm602_vm1, %v540_v18 }
 0x103   : > { %v545_v21 = vadd.f32 %v1416_v39, %v544_v20 }
 0x104   : > { %v1205_v23 = vpop.f32.mrf.mxu0 }
 0x105   : > { %1252 = vmatprep.mubr.msk.f32.mxu1 %vm602_vm1, %v545_v21  ;;  %v560_v26 = vadd.f32 %v1205_v23, %v1416_v39 }
 0x106   : > { %v554_v24 = vpop.f32.mrf.mxu0  ;;  %1253 = vmatmul.mubr.msk.f32.gmra.mxu1 %vm602_vm1, %v550_v22 }
 0x107   : > { %v555_v25 = vadd.f32 %v1416_v39, %v554_v24 }
 0x108   : > { %v1208_v27 = vpop.f32.mrf.mxu0 }
 0x109   : > { %1255 = vmatprep.mubr.msk.f32.mxu1 %vm602_vm1, %v555_v25  ;;  %v570_v30 = vadd.f32 %v1208_v27, %v1416_v39 }
 0x10a   : > { %v564_v28 = vpop.f32.mrf.mxu0  ;;  %1256 = vmatmul.mubr.msk.f32.gmra.mxu1 %vm602_vm1, %v560_v26 }
 0x10b   : > { %v565_v29 = vadd.f32 %v1416_v39, %v564_v28 }
 0x10c   : > { %v1211_v31 = vpop.f32.mrf.mxu0 }
 0x10d   : > { %1258 = vmatprep.mubr.msk.f32.mxu1 %vm602_vm1, %v565_v29  ;;  %v580_v34 = vadd.f32 %v1211_v31, %v1416_v39 }
 0x10e   : > { %v574_v32 = vpop.f32.mrf.mxu0  ;;  %1259 = vmatmul.mubr.msk.f32.gmra.mxu1 %vm602_vm1, %v570_v30 }
 0x10f   : > { %v575_v33 = vadd.f32 %v1416_v39, %v574_v32 }
 0x110   : > { %v1214_v35 = vpop.f32.mrf.mxu0 }
 0x111   : > { %1261 = vmatprep.mubr.msk.f32.mxu1 %vm602_vm1, %v575_v33  ;;  %v590_v38 = vadd.f32 %v1214_v35, %v1416_v39 }
 0x112   : > { %v584_v36 = vpop.f32.mrf.mxu0  ;;  %1262 = vmatmul.mubr.msk.f32.gmra.mxu1 %vm602_vm1, %v580_v34 }
 0x113   : > { %v585_v37 = vadd.f32 %v1416_v39, %v584_v36 }
 0x115   : > { %1264 = vmatprep.mubr.msk.f32.mxu1 %vm602_vm1, %v585_v37 }
 0x116   : > { %1265 = vmatmul.mubr.msk.f32.gmra.mxu1 %vm602_vm1, %v590_v38 }
 0x19a   : > { %v1221_v39 = vpop.f32.mrf.mxu1 }
 0x19b   : > { %v771_v41 = vadd.f32 %v1221_v39, %v1485_v40 }
 0x19c   : > { %v765_v42 = vpop.f32.mrf.mxu1 }
 0x19d   : > { %925 = vst [vmem:[%s1492_s19 + $0x8] sm:$0xff] %v771_v41  ;;  %v766_v43 = vadd.f32 %v1485_v40, %v765_v42 }
 0x19e   : > { %v1224_v44 = vpop.f32.mrf.mxu1 }
 0x19f   : > { %924 = vst [vmem:[%s1492_s19] sm:$0xff] %v766_v43  ;;  %v781_v45 = vadd.f32 %v1224_v44, %v1485_v40 }
 0x1a0   : > { %v775_v46 = vpop.f32.mrf.mxu1 }
 0x1a1   : > { %927 = vst [vmem:[%s1492_s19 + $0x18] sm:$0xff] %v781_v45  ;;  %v776_v47 = vadd.f32 %v1485_v40, %v775_v46 }
 0x1a2   : > { %v1227_v48 = vpop.f32.mrf.mxu1 }
 0x1a3   : > { %926 = vst [vmem:[%s1492_s19 + $0x10] sm:$0xff] %v776_v47  ;;  %v791_v49 = vadd.f32 %v1227_v48, %v1485_v40 }
 0x1a4   : > { %v785_v50 = vpop.f32.mrf.mxu1 }
 0x1a5   : > { %929 = vst [vmem:[%s1492_s19 + $0x28] sm:$0xff] %v791_v49  ;;  %v786_v51 = vadd.f32 %v1485_v40, %v785_v50 }
 0x1a6   : > { %v1230_v52 = vpop.f32.mrf.mxu1 }
 0x1a7   : > { %928 = vst [vmem:[%s1492_s19 + $0x20] sm:$0xff] %v786_v51  ;;  %v801_v53 = vadd.f32 %v1230_v52, %v1485_v40 }
 0x1a8   : > { %v795_v54 = vpop.f32.mrf.mxu1 }
 0x1a9   : > { %931 = vst [vmem:[%s1492_s19 + $0x38] sm:$0xff] %v801_v53  ;;  %v796_v55 = vadd.f32 %v1485_v40, %v795_v54 }
 0x1aa   : > { %v1233_v56 = vpop.f32.mrf.mxu1 }
 0x1ab   : > { %930 = vst [vmem:[%s1492_s19 + $0x30] sm:$0xff] %v796_v55  ;;  %v811_v57 = vadd.f32 %v1233_v56, %v1485_v40 }
 0x1ac   : > { %v805_v58 = vpop.f32.mrf.mxu1 }
 0x1ad   : > { %933 = vst [vmem:[%s1492_s19 + $0x48] sm:$0xff] %v811_v57  ;;  %v806_v59 = vadd.f32 %v1485_v40, %v805_v58 }
 0x1ae   : > { %v1236_v60 = vpop.f32.mrf.mxu1 }
 0x1af   : > { %932 = vst [vmem:[%s1492_s19 + $0x40] sm:$0xff] %v806_v59  ;;  %v821_v61 = vadd.f32 %v1236_v60, %v1485_v40 }
 0x1b0   : > { %v815_v62 = vpop.f32.mrf.mxu1 }
 0x1b1   : > { %935 = vst [vmem:[%s1492_s19 + $0x58] sm:$0xff] %v821_v61  ;;  %v816_v63 = vadd.f32 %v1485_v40, %v815_v62 }
 0x1b2   : > { %v1239_v0 = vpop.f32.mrf.mxu1 }
 0x1b3   : > { %934 = vst [vmem:[%s1492_s19 + $0x50] sm:$0xff] %v816_v63  ;;  %v831_v1 = vadd.f32 %v1239_v0, %v1485_v40 }
 0x1b4   : > { %v825_v2 = vpop.f32.mrf.mxu1 }
 0x1b5   : > { %937 = vst [vmem:[%s1492_s19 + $0x68] sm:$0xff] %v831_v1  ;;  %v826_v3 = vadd.f32 %v1485_v40, %v825_v2 }
 0x1b6   : > { %v1242_v4 = vpop.f32.mrf.mxu1 }
 0x1b7   : > { %936 = vst [vmem:[%s1492_s19 + $0x60] sm:$0xff] %v826_v3  ;;  %v841_v5 = vadd.f32 %v1242_v4, %v1485_v40 }
 0x1b8   : > { %v835_v6 = vpop.f32.mrf.mxu1 }
 0x1b9   : > { %939 = vst [vmem:[%s1492_s19 + $0x78] sm:$0xff] %v841_v5  ;;  %v836_v7 = vadd.f32 %v1485_v40, %v835_v6 }
 0x1ba   : > { %v1245_v8 = vpop.f32.mrf.mxu1 }
 0x1bb   : > { %938 = vst [vmem:[%s1492_s19 + $0x70] sm:$0xff] %v836_v7  ;;  %v851_v9 = vadd.f32 %v1245_v8, %v1485_v40 }
 0x1bc   : > { %v845_v10 = vpop.f32.mrf.mxu1 }
 0x1bd   : > { %941 = vst [vmem:[%s1492_s19 + $0x88] sm:$0xff] %v851_v9  ;;  %v846_v11 = vadd.f32 %v1485_v40, %v845_v10 }
 0x1be   : > { %v1248_v12 = vpop.f32.mrf.mxu1 }
 0x1bf   : > { %940 = vst [vmem:[%s1492_s19 + $0x80] sm:$0xff] %v846_v11  ;;  %v861_v13 = vadd.f32 %v1248_v12, %v1485_v40 }
 0x1c0   : > { %v855_v14 = vpop.f32.mrf.mxu1 }
 0x1c1   : > { %943 = vst [vmem:[%s1492_s19 + $0x98] sm:$0xff] %v861_v13  ;;  %v856_v15 = vadd.f32 %v1485_v40, %v855_v14 }
 0x1c2   : > { %v1251_v16 = vpop.f32.mrf.mxu1 }
 0x1c3   : > { %942 = vst [vmem:[%s1492_s19 + $0x90] sm:$0xff] %v856_v15  ;;  %v871_v17 = vadd.f32 %v1251_v16, %v1485_v40 }
 0x1c4   : > { %v865_v18 = vpop.f32.mrf.mxu1 }
 0x1c5   : > { %945 = vst [vmem:[%s1492_s19 + $0xa8] sm:$0xff] %v871_v17  ;;  %v866_v19 = vadd.f32 %v1485_v40, %v865_v18 }
 0x1c6   : > { %v1254_v20 = vpop.f32.mrf.mxu1 }
 0x1c7   : > { %944 = vst [vmem:[%s1492_s19 + $0xa0] sm:$0xff] %v866_v19  ;;  %v881_v21 = vadd.f32 %v1254_v20, %v1485_v40 }
 0x1c8   : > { %v875_v22 = vpop.f32.mrf.mxu1 }
 0x1c9   : > { %947 = vst [vmem:[%s1492_s19 + $0xb8] sm:$0xff] %v881_v21  ;;  %v876_v23 = vadd.f32 %v1485_v40, %v875_v22 }
 0x1ca   : > { %v1257_v24 = vpop.f32.mrf.mxu1 }
 0x1cb   : > { %946 = vst [vmem:[%s1492_s19 + $0xb0] sm:$0xff] %v876_v23  ;;  %v891_v25 = vadd.f32 %v1257_v24, %v1485_v40 }
 0x1cc   : > { %v885_v26 = vpop.f32.mrf.mxu1 }
 0x1cd   : > { %949 = vst [vmem:[%s1492_s19 + $0xc8] sm:$0xff] %v891_v25  ;;  %v886_v27 = vadd.f32 %v1485_v40, %v885_v26 }
 0x1ce   : > { %v1260_v28 = vpop.f32.mrf.mxu1 }
 0x1cf   : > { %948 = vst [vmem:[%s1492_s19 + $0xc0] sm:$0xff] %v886_v27  ;;  %v901_v29 = vadd.f32 %v1260_v28, %v1485_v40 }
 0x1d0   : > { %v895_v30 = vpop.f32.mrf.mxu1 }
 0x1d1   : > { %951 = vst [vmem:[%s1492_s19 + $0xd8] sm:$0xff] %v901_v29  ;;  %v896_v31 = vadd.f32 %v1485_v40, %v895_v30 }
 0x1d2   : > { %v1263_v32 = vpop.f32.mrf.mxu1 }
 0x1d3   : > { %950 = vst [vmem:[%s1492_s19 + $0xd0] sm:$0xff] %v896_v31  ;;  %v911_v33 = vadd.f32 %v1263_v32, %v1485_v40 }
 0x1d4   : > { %v905_v34 = vpop.f32.mrf.mxu1 }
 0x1d5   : > { %953 = vst [vmem:[%s1492_s19 + $0xe8] sm:$0xff] %v911_v33  ;;  %v906_v35 = vadd.f32 %v1485_v40, %v905_v34 }
 0x1d6   : > { %v1266_v36 = vpop.f32.mrf.mxu1 }
 0x1d7   : > { %952 = vst [vmem:[%s1492_s19 + $0xe0] sm:$0xff] %v906_v35  ;;  %v921_v37 = vadd.f32 %v1266_v36, %v1485_v40 }
 0x1d8   : > { %v915_v38 = vpop.f32.mrf.mxu1 }
 0x1d9   : > { %955 = vst [vmem:[%s1492_s19 + $0xf8] sm:$0xff] %v921_v37  ;;  %v916_v39 = vadd.f32 %v1485_v40, %v915_v38 }
 0x1db   : > { %954 = vst [vmem:[%s1492_s19 + $0xf0] sm:$0xff] %v916_v39 }
 0x1dc PF: > { %s15_s18 = sadd.s32 1, %s1281_s18  }
 0x1dd   : > { %p12_p4 = scmp.ge.s32.totalorder %s15_s18, 4  }
 0x1df   :  { %14 = sbr.rel (!%p12_p4) target bundleno = 1 (0x1), region = 70 }

</bundles_post_ra>
